<compile_context>
chip_gen: v5e
topology: v5e:2x2
jax: 0.10.0
libtpu: 0.0.40
codegen_flags: <defaults>
</compile_context>

<pallas_src>
import functools
import math

import jax
import jax.numpy as jnp
from jax.experimental import pallas as pl
from jax.experimental.pallas import tpu as pltpu


# ---------------------------------------------------------------------------
# Kernel
# ---------------------------------------------------------------------------
def _cyclic_perm_kernel(x_ref, out_ref, *, shift):
    """out[r, i] = x[r, (i - shift) mod F]  (np.roll / torch.roll semantics).

    Single XLU lane rotation on the (tb, F) VMEM tile; `shift` is a static
    non-negative Python int and `axis` is the non-negative last axis.
    """
    out_ref[...] = pltpu.roll(x_ref[...], shift=shift, axis=1)


# ---------------------------------------------------------------------------
# Tiling / dispatch heuristics
# ---------------------------------------------------------------------------
_TARGET_TILE_BYTES = 4 << 20   # per-buffer tile target (microseconds of DMA even on v7x)
_MAX_TILE_BYTES = 8 << 20      # 4 buffers x 8 MiB = 32 MiB, inside the explicit limit
_VMEM_LIMIT_BYTES = 48 << 20   # > v5e's 16 MiB scoped default, <= v7x's 64 MiB physical


def _ceil_to(n, m):
    return -(-n // m) * m


def _pick_batch_tile(B, row_bytes, block_rows):
    if block_rows is not None:
        return int(block_rows)
    if B <= 8:
        return B  # one block; block dim == full dim is always legal
    rows_fit = max(8, (_TARGET_TILE_BYTES // max(1, row_bytes)) // 8 * 8)
    if rows_fit >= B:
        if B * row_bytes > (2 << 20):
            # Force >=2 grid steps: lets double-buffering overlap DMA with the
            # rotate and lets v7x's two TensorCores split the stream.
            return min(rows_fit, _ceil_to((B + 1) // 2, 8))
        return B  # small array: one block, no per-step overhead at all
    return rows_fit  # multiple of 8, < B


def _roll_last_dim_pallas(x2d, s, block_rows, donate):
    B, F = x2d.shape
    itemsize = jnp.dtype(x2d.dtype).itemsize
    tb = _pick_batch_tile(B, F * itemsize, block_rows)

    kernel = functools.partial(_cyclic_perm_kernel, shift=s)
    call = pl.pallas_call(
        kernel,
        out_shape=jax.ShapeDtypeStruct((B, F), x2d.dtype),
        grid=(pl.cdiv(B, tb),),  # ragged last block is clamped/masked by Pallas
        in_specs=[pl.BlockSpec((tb, F), lambda i: (i, 0))],
        out_specs=pl.BlockSpec((tb, F), lambda i: (i, 0)),
        compiler_params=pltpu.CompilerParams(
            dimension_semantics=("parallel",),
            vmem_limit_bytes=_VMEM_LIMIT_BYTES,
        ),
        # Pure-bandwidth op: tell XLA so it can schedule neighbors around it.
        cost_estimate=pl.CostEstimate(
            flops=0, transcendentals=0, bytes_accessed=2 * B * F * itemsize),
        input_output_aliases=({0: 0} if donate else {}),
    )
    return call(x2d)


# ---------------------------------------------------------------------------
# Public wrappers (match CyclicPermutation.forward / .inverse)
# ---------------------------------------------------------------------------
def cyclic_permutation_forward(x, shift=1, dim=-1, *, block_rows=None, donate=False):
    """Equivalent of CyclicPermutation(shift, dim).forward(x).

    Returns (outputs, logabsdet) with outputs.shape == x.shape and
    logabsdet.shape == (x.shape[0],), dtype matching x.
    """
    x = jnp.asarray(x)
    if x.ndim < 2:
        raise ValueError("expected input of rank >= 2 (batch, ..., features)")

    logabsdet = jnp.zeros((x.shape[0],), dtype=x.dtype)

    axis = dim % x.ndim
    F = x.shape[axis]
    s = shift % F  # static, non-negative Python int
    if s == 0:
        return x, logabsdet  # identity: no data movement at all

    # shift is a module hyperparameter -> static; a runtime-varying shift would
    # go through PrefetchScalarGridSpec/SMEM instead of functools.partial.
    itemsize = jnp.dtype(x.dtype).itemsize

    if axis != x.ndim - 1:
        # TODO(synk): dim != -1 rolls fall back to XLA; a sublane/segmented
        # Pallas roll would be needed to keep them in-kernel.
        return jnp.roll(x, shift=s, axis=axis), logabsdet

    rows = math.prod(x.shape[:-1])
    if F < 128 or F % 128 != 0 or min(rows, 8) * F * itemsize > _MAX_TILE_BYTES:
        # Lane-sparse / unaligned feature dims hit masked partial stores, and
        # very wide F would blow the per-tile VMEM budget.
        # TODO(synk): wrap-aware F-axis tiling for extremely wide feature dims.
        return jnp.roll(x, shift=s, axis=-1), logabsdet

    out2d = _roll_last_dim_pallas(x.reshape(rows, F), s, block_rows, donate)
    return out2d.reshape(x.shape), logabsdet


def cyclic_permutation_inverse(x, shift=1, dim=-1, *, block_rows=None, donate=False):
    """Equivalent of CyclicPermutation(shift, dim).inverse(x)."""
    return cyclic_permutation_forward(
        x, shift=-shift, dim=dim, block_rows=block_rows, donate=donate)


# ---------------------------------------------------------------------------
# Self-test
# ---------------------------------------------------------------------------
if __name__ == "__main__":
    key = jax.random.PRNGKey(0)
    batch, features = 4, 256
    x = jax.random.normal(key, (batch, features), dtype=jnp.float32)

    # Forward / inverse for positive and negative shifts (sign-convention check).
    for shift in (1, 5, -3):
        outputs, logabsdet = cyclic_permutation_forward(x, shift=shift)
        outputs = jax.block_until_ready(outputs)
        logabsdet = jax.block_until_ready(logabsdet)

        ref = jnp.roll(x, shift=shift, axis=-1)
        assert outputs.shape == x.shape and outputs.dtype == x.dtype
        assert logabsdet.shape == (batch,) and logabsdet.dtype == x.dtype
        assert jnp.array_equal(outputs, ref), f"roll mismatch for shift={shift}"
        assert jnp.all(logabsdet == 0)

        inv, _ = cyclic_permutation_inverse(outputs, shift=shift)
        assert jnp.array_equal(jax.block_until_ready(inv), x)

    # Ragged-batch path: grid = cdiv(20, 8) = 3 with a masked partial last
    # block (no jnp.pad / slice extra HBM passes).
    x2 = jax.random.normal(jax.random.PRNGKey(1), (20, 256), dtype=jnp.float32)
    out2, lad2 = cyclic_permutation_forward(x2, shift=7, block_rows=8)
    out2 = jax.block_until_ready(out2)
    assert jnp.array_equal(out2, jnp.roll(x2, shift=7, axis=-1))
    assert jnp.all(jax.block_until_ready(lad2) == 0)

    # Identity special case (shift multiple of F): no kernel launch.
    out3, _ = cyclic_permutation_forward(x, shift=features)
    assert jnp.array_equal(jax.block_until_ready(out3), x)

    # Lane-sparse feature dim -> XLA fallback path.
    x4 = jax.random.normal(jax.random.PRNGKey(2), (4, 60), dtype=jnp.float32)
    out4, _ = cyclic_permutation_forward(x4, shift=3)
    assert jnp.array_equal(jax.block_until_ready(out4), jnp.roll(x4, 3, axis=-1))

    # donate=True exercises input_output_aliases={0: 0}; x5 is not reused after.
    x5 = jax.random.normal(jax.random.PRNGKey(3), (16, 256), dtype=jnp.float32)
    ref5 = jax.block_until_ready(jnp.roll(x5, 2, axis=-1))
    out5, _ = cyclic_permutation_forward(x5, shift=2, block_rows=8, donate=True)
    assert jnp.array_equal(jax.block_until_ready(out5), ref5)

    print("KERNEL_OK")
</pallas_src>

<mosaic_0001>
module attributes {stable_mosaic.version = 11 : i64} {
  func.func @_cyclic_perm_kernel(%arg0: i32, %arg1: memref<4x256xf32, #tpu.memory_space<vmem>>, %arg2: memref<4x256xf32, #tpu.memory_space<vmem>>) attributes {dimension_semantics = [#tpu.dimension_semantics<parallel>], iteration_bounds = array<i64: 1>, scalar_prefetch = 0 : i64, scratch_operands = 0 : i64, tpu.core_type = #tpu.core_type<tc>, window_params = [{transform_indices = @transform_0, window_bounds = array<i64: 4, 256>}, {transform_indices = @transform_1, window_bounds = array<i64: 4, 256>}]} {
    %c0 = arith.constant 0 : index
    %c0_0 = arith.constant 0 : index
    %0 = vector.load %arg1[%c0, %c0_0] : memref<4x256xf32, #tpu.memory_space<vmem>>, vector<4x256xf32>
    %c1_i32 = arith.constant 1 : i32
    %1 = tpu.dynamic_rotate %0 by %c1_i32 dim 1 : vector<4x256xf32>, i32 -> vector<4x256xf32>
    %c0_1 = arith.constant 0 : index
    %c0_2 = arith.constant 0 : index
    %2 = vector.load %arg2[%c0_1, %c0_2] : memref<4x256xf32, #tpu.memory_space<vmem>>, vector<4x256xf32>
    tpu.vector_store %arg2[%c0_1, %c0_2], %1 {strides = array<i32>} : memref<4x256xf32, #tpu.memory_space<vmem>>, vector<4x256xf32>,
    return
  }
  func.func @transform_0(%arg0: i32) -> (i32, i32) {
    %c0_i32 = arith.constant 0 : i32
    %c0_i32_0 = arith.constant 0 : i32
    return %arg0, %c0_i32 : i32, i32
  }
  func.func @transform_1(%arg0: i32) -> (i32, i32) {
    %c0_i32 = arith.constant 0 : i32
    %c0_i32_0 = arith.constant 0 : i32
    return %arg0, %c0_i32 : i32, i32
  }
}

</mosaic_0001>

<bundles_post_ra>
// kernel: tpu_custom_call.1
= control target key start
LH: loop header
LB: loop body
LE: loop exit
PB: predicated region body
PF: predicated region fallthrough
CT: control target
= control target key end

     0   :  { %6 = vsyncpa [#allocation3], 0  ;;  %s137_s0 = inlined_call_operand.hbm [shape: f32[4,256], index: 0, kind: input, shape index: {}]   ;;  %s138_s1 = inlined_call_operand.hbm [shape: f32[4,256], index: 1, kind: output, shape index: {}]  }
   0x1   :  { %7 = vsyncpa [#allocation4], 0  ;;  %s13_s8 = sshll.u32 %s137_s0, 4  ;;  %s118_s9 = smov [#allocation2]   ;;  %s14_s8 = int_to_ptr.hbm [resolvable:$true] %s13_s8 }
   0x2   :  { %s15_s10 = sshll.u32 %s118_s9, 4  ;;  %s16_s10 = int_to_ptr.vmem [resolvable:$true] %s15_s10 }
   0x3   :  { %18 = dma.hbm_to_vmem [thread:$0]  %s14_s8, 128, %s16_s10, [#allocation3]  }
   0x4   :  { %114 = dma.done.wait [#allocation3], 128  }
   0x5   :  { %115 = vsyncadd [#allocation3], 4294967168  ;;  %v23_v0 = vld [vmem:[#allocation2] sm:$0xff]  ;;  %s119_s11 = smov 1   ;;  %v34_v3 = vlaneseq  ;;  %s120_s0 = smov [#allocation5]   ;;  %vm42_vm1 = vcmask 1043456  }
   0x6   :  { %25 = vst [vmem:[#allocation1] ss:$2 sm:$0xff] %v23_v0  ;;  %s51_s12 = sshll.u32 %s120_s0, 4  ;;  %s53_s15 = sshll.u32 %s138_s1, 4  ;;  %s52_s12 = int_to_ptr.vmem [resolvable:$true] %s51_s12  ;;  %s54_s15 = int_to_ptr.hbm [resolvable:$true] %s53_s15 }
   0x7   :  { %v35_v5 = vand.u32 127, %v34_v3 }
   0x9   :  { %vm36_vm0 = vcmp.lt.s32.totalorder %v35_v5, 1 }
   0xd   :  { %v26_v1 = vld.sshfl [vmem:[#allocation1] sm:$0xff pattern:$0x75316420]  ;;  %v27_v2 = vld.sshfl [vmem:[#allocation1 + $0x8] sm:$0xff pattern:$0x75316420] }
   0xe   :  { %30 = vrot.lane.b32.xlu0 %v26_v1, %s119_s11 }
  0x16   :  { %32 = vrot.lane.b32.xlu0 %v27_v2, %s119_s11 }
  0x80   :  { %v31_v4 = vpop.permute.xlu0 %30 }
  0x88   :  { %v33_v6 = vpop.permute.xlu0 %32 }
  0x89   :  { %v37_v7 = vsel %vm36_vm0, %v31_v4, %v33_v6  ;;  %v38_v9 = vsel %vm36_vm0, %v33_v6, %v31_v4 }
  0x8a   :  { %v41_v8 = vrot.slane %v37_v7, 4 }
  0x8c   :  { %v43_v10 = vsel %vm42_vm1, %v38_v9, %v41_v8 }
  0x8d   :  { %45 = vst [vmem:[#allocation5] sm:$0xff] %v43_v10 }
  0x8e   :  { %56 = dma.vmem_to_hbm [thread:$0]  %s52_s12, 128, %s54_s15, [#allocation4]  }
  0x8f   :  { %116 = dma.done.wait [#allocation4], 128  }
  0x90   :  { %117 = vsyncadd [#allocation4], 4294967168 }
  0x91   :  { %61 = vsyncpa [#allocation3], 1 }
  0x92   :  { %62 = vsyncpa [#allocation4], 1 }

</bundles_post_ra>
